<compile_context>
chip_gen: v6e
topology: v6e:2x2x1
jax: 0.10.0
libtpu: 0.0.40
codegen_flags: <defaults>
</compile_context>

<pallas_src>
import functools
import math

import jax
import jax.numpy as jnp
from jax.experimental import pallas as pl
from jax.experimental.pallas import tpu as pltpu

_LANES = 128  # vreg lane width; keep last dim a multiple of 128 (unmasked vst)


def _h_swish_kernel(x_ref, o_ref, *, compute_dtype):
    # y = x * relu6(x + 3) / 6, fully fused on the VPU.
    x = x_ref[...].astype(compute_dtype)
    zero = jnp.asarray(0.0, compute_dtype)
    three = jnp.asarray(3.0, compute_dtype)
    six = jnp.asarray(6.0, compute_dtype)
    y = x * (jnp.clip(x + three, zero, six) / six)
    o_ref[...] = y.astype(o_ref.dtype)


def _native_bf16_ok():
    """bf16 VPU math is native on v6e/v7x; keep f32 math on v5e/v5lite."""
    try:
        kind = jax.devices()[0].device_kind.lower()
    except Exception:
        return False
    return not any(tag in kind for tag in ("v5 lite", "v5lite", "v5e"))


def h_swish(x, *, block_bytes=2 * 1024 * 1024):
    """Elementwise h_swish over an arbitrarily-shaped float array (NCHW etc.).

    The array is viewed as a lane-dense (rows, 128) slab and processed by a
    single pallas_call with ~2 MiB row blocks.
    """
    shape, dtype = x.shape, x.dtype
    if not jnp.issubdtype(dtype, jnp.floating):
        raise TypeError(f"h_swish is defined for floating dtypes, got {dtype}")
    total = math.prod(shape)
    if total == 0:
        return x

    itemsize = jnp.dtype(dtype).itemsize
    # Native sublane tile: 8 rows for 4-byte, 16 for 2-byte, 32 for 1-byte.
    sub = max(8, 32 // itemsize)

    # Pad only to the next multiple of 128 lanes, and only when needed.
    rem = total % _LANES
    padded_total = total if rem == 0 else total + (_LANES - rem)
    rows = padded_total // _LANES

    # Rows per block from the VMEM byte budget, rounded to the dtype's tile.
    tm_budget = max(sub, (block_bytes // (_LANES * itemsize)) // sub * sub)
    if rows <= tm_budget:
        tm = rows  # full-extent dim is always a legal block shape
        grid = 1
    else:
        tm = tm_budget
        grid = pl.cdiv(rows, tm)  # ragged last block is masked by Pallas

    flat = x.reshape(-1)
    if padded_total != total:
        # <= 127 zero elements; h_swish(0) == 0 and the tail is sliced off.
        flat = jnp.pad(flat, (0, padded_total - total))
    x2d = flat.reshape(rows, _LANES)

    compute_dtype = (
        dtype if (dtype == jnp.bfloat16 and _native_bf16_ok()) else jnp.float32
    )

    out = pl.pallas_call(
        functools.partial(_h_swish_kernel, compute_dtype=compute_dtype),
        out_shape=jax.ShapeDtypeStruct((rows, _LANES), dtype),
        grid=(grid,),
        in_specs=[pl.BlockSpec((tm, _LANES), lambda i: (i, 0))],
        out_specs=pl.BlockSpec((tm, _LANES), lambda i: (i, 0)),
        compiler_params=pltpu.CompilerParams(
            dimension_semantics=("parallel",)),
    )(x2d)

    out = out.reshape(-1)
    if padded_total != total:
        out = out[:total]
    return out.reshape(shape)


# ------------------------- pure-JAX reference (check) ------------------------

def _ref_h_swish(x):
    return x * jnp.clip(x + 3.0, 0.0, 6.0) / 6.0


# ----------------------------------- main ------------------------------------

if __name__ == "__main__":
    # Small NCHW input like the PyTorch module would see; scaled so values
    # exercise all three relu6 regions (< -3, linear, > 3).
    x = jax.random.normal(jax.random.PRNGKey(0), (2, 4, 16, 16), jnp.float32) * 4.0
    out = jax.block_until_ready(jax.jit(h_swish)(x))
    assert out.shape == x.shape and out.dtype == x.dtype
    assert float(jnp.max(jnp.abs(out - _ref_h_swish(x)))) < 1e-5

    # Ragged element count (not a multiple of 128): exercises the minimal-pad
    # path and the non-multiple-of-8 single-block case.
    x2 = jax.random.normal(jax.random.PRNGKey(1), (3, 5, 7, 11), jnp.float32) * 4.0
    out2 = jax.block_until_ready(jax.jit(h_swish)(x2))
    assert out2.shape == x2.shape
    assert float(jnp.max(jnp.abs(out2 - _ref_h_swish(x2)))) < 1e-5

    # bf16 path (native bf16 math on v6e/v7x, f32 math on v5e).
    x3 = (jax.random.normal(jax.random.PRNGKey(2), (2, 4, 16, 16), jnp.float32)
          * 4.0).astype(jnp.bfloat16)
    out3 = jax.block_until_ready(jax.jit(h_swish)(x3))
    ref3 = _ref_h_swish(x3.astype(jnp.float32)).astype(jnp.bfloat16)
    assert out3.dtype == jnp.bfloat16
    assert float(jnp.max(jnp.abs(out3.astype(jnp.float32)
                                 - ref3.astype(jnp.float32)))) < 0.1

    print("KERNEL_OK")
</pallas_src>

<mosaic_0001>
module attributes {stable_mosaic.version = 11 : i64} {
  func.func @_h_swish_kernel(%arg0: i32, %arg1: memref<16x128xf32, #tpu.memory_space<vmem>>, %arg2: memref<16x128xf32, #tpu.memory_space<vmem>>) attributes {dimension_semantics = [#tpu.dimension_semantics<parallel>], iteration_bounds = array<i64: 1>, scalar_prefetch = 0 : i64, scratch_operands = 0 : i64, tpu.core_type = #tpu.core_type<tc>, window_params = [{transform_indices = @transform_0, window_bounds = array<i64: 16, 128>}, {transform_indices = @transform_1, window_bounds = array<i64: 16, 128>}]} {
    %c0 = arith.constant 0 : index
    %c0_0 = arith.constant 0 : index
    %0 = vector.load %arg1[%c0, %c0_0] : memref<16x128xf32, #tpu.memory_space<vmem>>, vector<16x128xf32>
    %cst = arith.constant 3.000000e+00 : f32
    %1 = vector.broadcast %cst : f32 to vector<16x128xf32>
    %2 = arith.addf %0, %1 : vector<16x128xf32>
    %cst_1 = arith.constant 0.000000e+00 : f32
    %cst_2 = arith.constant 6.000000e+00 : f32
    %3 = vector.broadcast %cst_1 : f32 to vector<16x128xf32>
    %4 = arith.maximumf %3, %2 : vector<16x128xf32>
    %5 = vector.broadcast %cst_2 : f32 to vector<16x128xf32>
    %6 = arith.minimumf %5, %4 : vector<16x128xf32>
    %cst_3 = arith.constant 6.000000e+00 : f32
    %7 = vector.broadcast %cst_3 : f32 to vector<16x128xf32>
    %8 = arith.divf %6, %7 : vector<16x128xf32>
    %9 = arith.mulf %0, %8 : vector<16x128xf32>
    %c0_4 = arith.constant 0 : index
    %c0_5 = arith.constant 0 : index
    %10 = vector.load %arg2[%c0_4, %c0_5] : memref<16x128xf32, #tpu.memory_space<vmem>>, vector<16x128xf32>
    tpu.vector_store %arg2[%c0_4, %c0_5], %9 {strides = array<i32>} : memref<16x128xf32, #tpu.memory_space<vmem>>, vector<16x128xf32>,
    return
  }
  func.func @transform_0(%arg0: i32) -> (i32, i32) {
    %c0_i32 = arith.constant 0 : i32
    %c0_i32_0 = arith.constant 0 : i32
    return %arg0, %c0_i32 : i32, i32
  }
  func.func @transform_1(%arg0: i32) -> (i32, i32) {
    %c0_i32 = arith.constant 0 : i32
    %c0_i32_0 = arith.constant 0 : i32
    return %arg0, %c0_i32 : i32, i32
  }
}

</mosaic_0001>

<bundles_post_ra>
// kernel: h_swish.1
= control target key start
LH: loop header
LB: loop body
LE: loop exit
PB: predicated region body
PF: predicated region fallthrough
CT: control target
= control target key end

     0   :  { %s49_s0 = inlined_call_operand.vmem [shape: f32[16,128], index: 0, kind: input, shape index: {}]   ;;  %s50_s1 = inlined_call_operand.vmem [shape: f32[16,128], index: 1, kind: output, shape index: {}]  }
   0x1   :  { %v8_v0 = vld [vmem:[%s49_s0] sm:$0xff]  ;;  %v9_v1 = vld [vmem:[%s49_s0 + $0x8] sm:$0xff] }
   0x2   :  { %v10_v2 = vadd.f32 3.0, %v8_v0  ;;  %v11_v3 = vadd.f32 3.0, %v9_v1 }
   0x4   :  { %v12_v4 = vmax.f32 %v10_v2, 0.0  ;;  %v13_v5 = vmax.f32 %v11_v3, 0.0 }
   0x6   :  { %v14_v6 = vmin.f32 %v12_v4, 6.0  ;;  %v15_v7 = vmin.f32 %v13_v5, 6.0 }
   0x8   :  { %v17_v8 = vmul.f32 0.16666667, %v14_v6  ;;  %v18_v9 = vmul.f32 0.16666667, %v15_v7 }
   0xa   :  { %v19_v10 = vmul.f32 %v17_v8, %v8_v0  ;;  %v20_v11 = vmul.f32 %v18_v9, %v9_v1 }
   0xc   :  { %21 = vst [vmem:[%s50_s1] sm:$0xff] %v19_v10  ;;  %22 = vst [vmem:[%s50_s1 + $0x8] sm:$0xff] %v20_v11 }

</bundles_post_ra>
